<compile_context>
chip_gen: v6e
topology: v6e:2x2x1
jax: 0.10.0
libtpu: 0.0.40
codegen_flags: <defaults>
</compile_context>

<pallas_src>
import jax
import jax.numpy as jnp
from jax import lax
from jax.experimental import pallas as pl
from jax.experimental.pallas import tpu as pltpu


def _ms_kernel_grouped(x_ref, o_ref):
    # Block: (Bn, Gc, 4, T). Sublane axis holds the 4 matrix components of one group.
    x = x_ref[...].astype(jnp.float32)
    l2 = jnp.sum(x * x, axis=2, keepdims=True) + 1e-6          # (Bn, Gc, 1, T)
    gate = jnp.maximum(1.0 - lax.rsqrt(l2), 0.0)               # == relu(l - 1) / l
    o_ref[...] = (x * gate).astype(o_ref.dtype)                # broadcast over the 4-axis


def _ms_kernel_packed(x_ref, o_ref):
    # Block: (Bn, Gc, 8, T). Sublanes 0..3 = group 2g, sublanes 4..7 = group 2g+1
    # (two 4-channel groups packed per 8-sublane tile -> no sublane padding).
    x = x_ref[...].astype(jnp.float32)
    x2 = x * x
    lo = lax.broadcasted_iota(jnp.int32, x2.shape, dimension=2) < 4
    l2a = jnp.sum(jnp.where(lo, x2, 0.0), axis=2, keepdims=True) + 1e-6   # (Bn, Gc, 1, T)
    l2b = jnp.sum(jnp.where(lo, 0.0, x2), axis=2, keepdims=True) + 1e-6
    ga = jnp.maximum(1.0 - lax.rsqrt(l2a), 0.0)                # per-group gate (EUP)
    gb = jnp.maximum(1.0 - lax.rsqrt(l2b), 0.0)
    gate = jnp.where(lo, ga, gb)                               # sublane select -> (Bn, Gc, 8, T)
    o_ref[...] = (x * gate).astype(o_ref.dtype)


def matrix_sigmoid(x, *, budget_bytes=4 << 20, vmem_limit_bytes=48 << 20):
    """x: (N, C, H, W), C % 4 == 0. Returns same shape/dtype."""
    N, C, H, W = x.shape
    assert C % 4 == 0, "channel dim must be a multiple of 4 (2x2 matrix components)"
    G = C // 4
    HW = H * W
    itemsize = jnp.dtype(x.dtype).itemsize

    # Pack two 4-channel groups per 8-sublane tile when possible (free reshape).
    packed = (G % 2 == 0)
    if packed:
        Gp, rows = G // 2, 8
        kernel = _ms_kernel_packed
    else:
        Gp, rows = G, 4
        kernel = _ms_kernel_grouped
    xr = x.reshape(N, Gp, rows, HW)

    # ---- tile selection: real (layout-padded) bytes per pipeline buffer <= budget ----
    elems = max(1, budget_bytes // itemsize)
    rows_pad = 8                                   # a 4-row slab still occupies 8 sublanes

    # Lane (spatial) tile: full HW if it fits, else largest 128-multiple under the cap.
    t_cap = max(128, (elems // rows_pad) // 128 * 128)
    if HW <= t_cap:
        T, nt = HW, 1
    else:
        T = t_cap
        nt = pl.cdiv(HW, T)                        # tail block masked by Pallas
    t_pad = -(-T // 128) * 128                     # lane-padded width for budget math

    # Channel tile (in units of `rows`-channel slabs): bounds VMEM for large C.
    gc_cap = max(1, elems // (rows_pad * t_pad))
    Gc = min(Gp, gc_cap)
    ng = pl.cdiv(Gp, Gc)

    # Batch tile: coarsen across N so small-HW inputs still get large blocks.
    bn_cap = max(1, elems // (Gc * rows_pad * t_pad))
    Bn = min(N, bn_cap)
    nb = pl.cdiv(N, Bn)

    spec = pl.BlockSpec((Bn, Gc, rows, T), lambda b, g, t: (b, g, 0, t))

    out = pl.pallas_call(
        kernel,
        out_shape=jax.ShapeDtypeStruct((N, Gp, rows, HW), x.dtype),
        grid_spec=pltpu.PrefetchScalarGridSpec(
            num_scalar_prefetch=0,
            grid=(nb, ng, nt),
            in_specs=[spec],
            out_specs=spec,
        ),
        compiler_params=pltpu.CompilerParams(
            dimension_semantics=("parallel", "parallel", "parallel"),
            vmem_limit_bytes=vmem_limit_bytes,
        ),
    )(xr)

    return out.reshape(N, C, H, W)


def matrix_sigmoid_ref(x):
    # Pure-JAX reference mirroring the PyTorch module literally.
    x2 = x ** 2
    l2 = x2[:, 0::4] + x2[:, 1::4] + x2[:, 2::4] + x2[:, 3::4] + 1e-6
    l = jnp.sqrt(l2)
    lr = jnp.repeat(l, 4, axis=1)
    return x * jnp.maximum(lr - 1.0, 0.0) / lr


if __name__ == "__main__":
    key = jax.random.PRNGKey(0)
    k1, k2, k3 = jax.random.split(key, 3)

    # 1) Packed path (C=8 -> two groups per 8-sublane tile), lane-dense HW = 256.
    x1 = jax.random.normal(k1, (2, 8, 16, 16), dtype=jnp.float32) * 2.0
    o1 = jax.block_until_ready(matrix_sigmoid(x1))
    assert o1.shape == x1.shape and o1.dtype == x1.dtype
    assert jnp.allclose(o1, matrix_sigmoid_ref(x1), atol=1e-5, rtol=1e-5), "mismatch (packed)"

    # 2) Odd-group fallback path (C=4 -> single group), HW not a multiple of 128.
    x2 = jax.random.normal(k2, (2, 4, 10, 10), dtype=jnp.float32) * 2.0
    o2 = jax.block_until_ready(matrix_sigmoid(x2))
    assert jnp.allclose(o2, matrix_sigmoid_ref(x2), atol=1e-5, rtol=1e-5), "mismatch (fallback)"

    # 3) Multi-block grid with masked spatial tail + batch/channel tiling (tiny budget).
    x3 = jax.random.normal(k3, (3, 16, 12, 16), dtype=jnp.float32) * 2.0   # HW = 192
    o3 = jax.block_until_ready(matrix_sigmoid(x3, budget_bytes=4096))
    assert jnp.allclose(o3, matrix_sigmoid_ref(x3), atol=1e-5, rtol=1e-5), "mismatch (tiled)"

    print("KERNEL_OK")
</pallas_src>

<mosaic_0001>
module attributes {stable_mosaic.version = 11 : i64} {
  func.func @_ms_kernel_packed(%arg0: i32, %arg1: i32, %arg2: i32, %arg3: memref<2x1x8x256xf32, #tpu.memory_space<vmem>>, %arg4: memref<2x1x8x256xf32, #tpu.memory_space<vmem>>) attributes {dimension_semantics = [#tpu.dimension_semantics<parallel>, #tpu.dimension_semantics<parallel>, #tpu.dimension_semantics<parallel>], iteration_bounds = array<i64: 1, 1, 1>, scalar_prefetch = 0 : i64, scratch_operands = 0 : i64, tpu.core_type = #tpu.core_type<tc>, window_params = [{transform_indices = @transform_0, window_bounds = array<i64: 2, 1, 8, 256>}, {transform_indices = @transform_1, window_bounds = array<i64: 2, 1, 8, 256>}]} {
    %c0 = arith.constant 0 : index
    %c0_0 = arith.constant 0 : index
    %c0_1 = arith.constant 0 : index
    %c0_2 = arith.constant 0 : index
    %0 = vector.load %arg3[%c0, %c0_0, %c0_1, %c0_2] : memref<2x1x8x256xf32, #tpu.memory_space<vmem>>, vector<2x1x8x256xf32>
    %1 = arith.mulf %0, %0 : vector<2x1x8x256xf32>
    %2 = tpu.iota {dimensions = array<i32: 2>} : vector<2x1x8x256xi32>
    %c4_i32 = arith.constant 4 : i32
    %3 = vector.broadcast %c4_i32 : i32 to vector<2x1x8x256xi32>
    %4 = arith.cmpi slt, %2, %3 : vector<2x1x8x256xi32>
    %cst = arith.constant 0.000000e+00 : f32
    %5 = vector.broadcast %cst : f32 to vector<2x1x8x256xf32>
    %6 = arith.select %4, %1, %5 : vector<2x1x8x256xi1>, vector<2x1x8x256xf32>
    %cst_3 = arith.constant dense<0.000000e+00> : vector<2x1x256xf32>
    %7 = vector.multi_reduction <add>, %6, %cst_3 [2] : vector<2x1x8x256xf32> to vector<2x1x256xf32>
    %8 = vector.shape_cast %7 : vector<2x1x256xf32> to vector<2x1x1x256xf32>
    %cst_4 = arith.constant 9.99999997E-7 : f32
    %9 = vector.broadcast %cst_4 : f32 to vector<2x1x1x256xf32>
    %10 = arith.addf %8, %9 : vector<2x1x1x256xf32>
    %cst_5 = arith.constant 0.000000e+00 : f32
    %11 = vector.broadcast %cst_5 : f32 to vector<2x1x8x256xf32>
    %12 = arith.select %4, %11, %1 : vector<2x1x8x256xi1>, vector<2x1x8x256xf32>
    %cst_6 = arith.constant dense<0.000000e+00> : vector<2x1x256xf32>
    %13 = vector.multi_reduction <add>, %12, %cst_6 [2] : vector<2x1x8x256xf32> to vector<2x1x256xf32>
    %14 = vector.shape_cast %13 : vector<2x1x256xf32> to vector<2x1x1x256xf32>
    %cst_7 = arith.constant 9.99999997E-7 : f32
    %15 = vector.broadcast %cst_7 : f32 to vector<2x1x1x256xf32>
    %16 = arith.addf %14, %15 : vector<2x1x1x256xf32>
    %17 = math.rsqrt %10 : vector<2x1x1x256xf32>
    %cst_8 = arith.constant 1.000000e+00 : f32
    %18 = vector.broadcast %cst_8 : f32 to vector<2x1x1x256xf32>
    %19 = arith.subf %18, %17 : vector<2x1x1x256xf32>
    %cst_9 = arith.constant 0.000000e+00 : f32
    %20 = vector.broadcast %cst_9 : f32 to vector<2x1x1x256xf32>
    %21 = arith.maximumf %19, %20 : vector<2x1x1x256xf32>
    %22 = math.rsqrt %16 : vector<2x1x1x256xf32>
    %cst_10 = arith.constant 1.000000e+00 : f32
    %23 = vector.broadcast %cst_10 : f32 to vector<2x1x1x256xf32>
    %24 = arith.subf %23, %22 : vector<2x1x1x256xf32>
    %cst_11 = arith.constant 0.000000e+00 : f32
    %25 = vector.broadcast %cst_11 : f32 to vector<2x1x1x256xf32>
    %26 = arith.maximumf %24, %25 : vector<2x1x1x256xf32>
    %27 = vector.shape_cast %21 : vector<2x1x1x256xf32> to vector<2x1x1x256xf32>
    %28 = vector.broadcast %27 : vector<2x1x1x256xf32> to vector<2x1x8x256xf32>
    %29 = vector.shape_cast %26 : vector<2x1x1x256xf32> to vector<2x1x1x256xf32>
    %30 = vector.broadcast %29 : vector<2x1x1x256xf32> to vector<2x1x8x256xf32>
    %31 = arith.select %4, %28, %30 : vector<2x1x8x256xi1>, vector<2x1x8x256xf32>
    %32 = arith.mulf %0, %31 : vector<2x1x8x256xf32>
    %c0_12 = arith.constant 0 : index
    %c0_13 = arith.constant 0 : index
    %c0_14 = arith.constant 0 : index
    %c0_15 = arith.constant 0 : index
    %33 = vector.load %arg4[%c0_12, %c0_13, %c0_14, %c0_15] : memref<2x1x8x256xf32, #tpu.memory_space<vmem>>, vector<2x1x8x256xf32>
    tpu.vector_store %arg4[%c0_12, %c0_13, %c0_14, %c0_15], %32 {strides = array<i32>} : memref<2x1x8x256xf32, #tpu.memory_space<vmem>>, vector<2x1x8x256xf32>,
    return
  }
  func.func @transform_0(%arg0: i32, %arg1: i32, %arg2: i32) -> (i32, i32, i32, i32) {
    %c0_i32 = arith.constant 0 : i32
    %c0_i32_0 = arith.constant 0 : i32
    return %arg0, %arg1, %c0_i32, %arg2 : i32, i32, i32, i32
  }
  func.func @transform_1(%arg0: i32, %arg1: i32, %arg2: i32) -> (i32, i32, i32, i32) {
    %c0_i32 = arith.constant 0 : i32
    %c0_i32_0 = arith.constant 0 : i32
    return %arg0, %arg1, %c0_i32, %arg2 : i32, i32, i32, i32
  }
}

</mosaic_0001>

<bundles_post_ra>
// kernel: tpu_custom_call.1
= control target key start
LH: loop header
LB: loop body
LE: loop exit
PB: predicated region body
PF: predicated region fallthrough
CT: control target
= control target key end

     0   :  { %6 = vsyncpa [#allocation3], 0  ;;  %s288_s0 = inlined_call_operand.hbm [shape: f32[2,1,8,256], index: 0, kind: input, shape index: {}]   ;;  %s289_s1 = inlined_call_operand.hbm [shape: f32[2,1,8,256], index: 1, kind: output, shape index: {}]  }
   0x1   :  { %7 = vsyncpa [#allocation4], 0  ;;  %s215_s6 = smov [#allocation2]  }
   0x2   :  { %s13_s7 = sshll.u32 %s215_s6, 4  ;;  %s14_s7 = int_to_ptr.vmem [resolvable:$true] %s13_s7 }
   0x3   :  { %s179_s8 = scalar_lea.vmem %s14_s7, 512  ;;  %p184_p1 = scmp.lt.s32.totalorder %s14_s7, %s14_s7 }
   0x4   :  { %p180_p0 = scmp.ne.s32.totalorder %s14_s7, %s179_s8  ;;  %p185_p2 = scmp.lt.s32.totalorder %s179_s8, %s179_s8 }
   0x6   :  { %p186_p3 = por %p185_p2, %p184_p1 }
   0x8   :  { %p187_p4 = pnand %p186_p3, %p180_p0 }
   0xa   :  { %190 = shalt.err (!%p187_p4)
}
   0xb   :  { %s216_s9 = smov 256   ;;  %s217_s10 = smov 16  }
   0xc   :  { %19 = dma.hbm_to_vmem [thread:$0]  %s288_s0, 512, %s14_s7, [#allocation3], %s216_s9, %s216_s9, %s217_s10  }
   0xd   :  { %211 = dma.done.wait [#allocation3], 512  }
   0xe   :  { %212 = vsyncadd [#allocation3], 4294966784  ;;  %v31_v0 = vlaneseq  ;;  %v237_v2 = vld [vmem:[#allocation2] sm:$0xff]  ;;  %v240_v3 = vld [vmem:[#allocation2 + $0x8] sm:$0xff]  ;;  %s218_s0 = smov [#allocation5]  }
   0xf   :  { %v242_v4 = vld [vmem:[#allocation2 + $0x10] sm:$0xff]  ;;  %v27_v5 = vmul.f32 %v237_v2, %v237_v2  ;;  %v28_v6 = vmul.f32 %v240_v3, %v240_v3  ;;  %v250_v8 = vld [vmem:[#allocation2 + $0x18] sm:$0xff]  ;;  %s139_s13 = sshll.u32 %s218_s0, 4  ;;  %s140_s13 = int_to_ptr.vmem [resolvable:$true] %s139_s13 }
  0x10   :  { %v235_v1 = vshrl.u32 %v31_v0, 7  ;;  %v29_v7 = vmul.f32 %v242_v4, %v242_v4  ;;  %v30_v9 = vmul.f32 %v250_v8, %v250_v8  ;;  %s191_s14 = scalar_lea.vmem %s140_s13, 512  ;;  %p196_p6 = scmp.lt.s32.totalorder %s140_s13, %s140_s13 }
  0x11   :  { %p192_p5 = scmp.ne.s32.totalorder %s140_s13, %s191_s14  ;;  %p197_p7 = scmp.lt.s32.totalorder %s191_s14, %s191_s14 }
  0x12   :  { %vm33_vm0 = vcmp.lt.s32.totalorder %v235_v1, 4 }
  0x13   :  { %v34_v10 = vsel %vm33_vm0, %v27_v5, 0.0  ;;  %v66_v11 = vsel %vm33_vm0, 0.0, %v27_v5  ;;  %v35_v12 = vsel %vm33_vm0, %v28_v6, 0.0  ;;  %v67_v13 = vsel %vm33_vm0, 0.0, %v28_v6  ;;  %p198_p8 = por %p197_p7, %p196_p6 }
  0x14   :  { %v38_v14 = vrot.slane %v34_v10, 4  ;;  %v70_v15 = vrot.slane %v66_v11, 4  ;;  %v44_v16 = vrot.slane %v35_v12, 4  ;;  %v76_v17 = vrot.slane %v67_v13, 4 }
  0x15   :  { %v36_v18 = vsel %vm33_vm0, %v29_v7, 0.0  ;;  %v68_v19 = vsel %vm33_vm0, 0.0, %v29_v7  ;;  %v37_v20 = vsel %vm33_vm0, %v30_v9, 0.0  ;;  %v69_v21 = vsel %vm33_vm0, 0.0, %v30_v9  ;;  %p199_p9 = pnand %p198_p8, %p192_p5 }
  0x16   :  { %v39_v22 = vadd.f32 %v38_v14, %v34_v10  ;;  %v71_v23 = vadd.f32 %v70_v15, %v66_v11  ;;  %v45_v24 = vadd.f32 %v44_v16, %v35_v12  ;;  %v77_v25 = vadd.f32 %v76_v17, %v67_v13 }
  0x17   :  { %v50_v26 = vrot.slane %v36_v18, 4  ;;  %v82_v27 = vrot.slane %v68_v19, 4  ;;  %v56_v28 = vrot.slane %v37_v20, 4  ;;  %v88_v29 = vrot.slane %v69_v21, 4 }
  0x18   :  { %v40_v30 = vrot.slane %v39_v22, 2  ;;  %v72_v31 = vrot.slane %v71_v23, 2  ;;  %v46_v32 = vrot.slane %v45_v24, 2  ;;  %v78_v33 = vrot.slane %v77_v25, 2 }
  0x19   :  { %v51_v34 = vadd.f32 %v50_v26, %v36_v18  ;;  %v83_v35 = vadd.f32 %v82_v27, %v68_v19  ;;  %v57_v36 = vadd.f32 %v56_v28, %v37_v20  ;;  %v89_v37 = vadd.f32 %v88_v29, %v69_v21 }
  0x1a   :  { %v41_v38 = vadd.f32 %v40_v30, %v39_v22  ;;  %v73_v39 = vadd.f32 %v72_v31, %v71_v23  ;;  %v47_v40 = vadd.f32 %v46_v32, %v45_v24  ;;  %v79_v41 = vadd.f32 %v78_v33, %v77_v25 }
  0x1b   :  { %v52_v42 = vrot.slane %v51_v34, 2  ;;  %v84_v43 = vrot.slane %v83_v35, 2  ;;  %v58_v44 = vrot.slane %v57_v36, 2  ;;  %v90_v45 = vrot.slane %v89_v37, 2 }
  0x1c   :  { %v42_v46 = vrot.slane %v41_v38, 1  ;;  %v74_v47 = vrot.slane %v73_v39, 1  ;;  %v48_v48 = vrot.slane %v47_v40, 1  ;;  %v80_v49 = vrot.slane %v79_v41, 1 }
  0x1d   :  { %v53_v50 = vadd.f32 %v52_v42, %v51_v34  ;;  %v85_v51 = vadd.f32 %v84_v43, %v83_v35  ;;  %v59_v52 = vadd.f32 %v58_v44, %v57_v36  ;;  %v91_v53 = vadd.f32 %v90_v45, %v89_v37 }
  0x1e   :  { %v43_v54 = vadd.f32 %v42_v46, %v41_v38  ;;  %v75_v55 = vadd.f32 %v74_v47, %v73_v39  ;;  %v49_v56 = vadd.f32 %v48_v48, %v47_v40  ;;  %v81_v57 = vadd.f32 %v80_v49, %v79_v41 }
  0x1f   :  { %v54_v58 = vrot.slane %v53_v50, 1  ;;  %v86_v59 = vrot.slane %v85_v51, 1  ;;  %v60_v60 = vrot.slane %v59_v52, 1  ;;  %v92_v61 = vrot.slane %v91_v53, 1 }
  0x20   :  { %v62_v62 = vadd.f32 1e-06, %v43_v54  ;;  %v94_v63 = vadd.f32 1e-06, %v75_v55  ;;  %v63_v0 = vadd.f32 1e-06, %v49_v56 }
  0x21   :  { %v95_v5 = vadd.f32 1e-06, %v81_v57  ;;  %v55_v6 = vadd.f32 %v54_v58, %v53_v50  ;;  %v87_v7 = vadd.f32 %v86_v59, %v85_v51  ;;  %v61_v9 = vadd.f32 %v60_v60, %v59_v52 }
  0x22   :  { %155 = vrsqrt.f32 %v62_v62  ;;  %v93_v10 = vadd.f32 %v92_v61, %v91_v53 }
  0x23   :  { %157 = vrsqrt.f32 %v94_v63  ;;  %v64_v11 = vadd.f32 1e-06, %v55_v6  ;;  %v96_v12 = vadd.f32 1e-06, %v87_v7  ;;  %v65_v13 = vadd.f32 1e-06, %v61_v9 }
  0x24   :  { %159 = vrsqrt.f32 %v63_v0  ;;  %v97_v14 = vadd.f32 1e-06, %v93_v10 }
  0x25   :  { %161 = vrsqrt.f32 %v95_v5 }
  0x26   :  { %163 = vrsqrt.f32 %v64_v11 }
  0x27   :  { %165 = vrsqrt.f32 %v96_v12 }
  0x28   :  { %167 = vrsqrt.f32 %v65_v13 }
  0x29   :  { %169 = vrsqrt.f32 %v97_v14 }
  0x2f   :  { %v156_v15 = vpop.eup %155 }
  0x30   :  { %v158_v16 = vpop.eup %157  ;;  %v102_v17 = vsub.f32 1.0, %v156_v15 }
  0x31   :  { %v160_v18 = vpop.eup %159  ;;  %v114_v19 = vsub.f32 1.0, %v158_v16 }
  0x32   :  { %v162_v20 = vpop.eup %161  ;;  %v106_v21 = vmax.f32 %v102_v17, 0.0  ;;  %v103_v22 = vsub.f32 1.0, %v160_v18 }
  0x33   :  { %v164_v23 = vpop.eup %163  ;;  %v118_v24 = vmax.f32 %v114_v19, 0.0  ;;  %v115_v25 = vsub.f32 1.0, %v162_v20 }
  0x34   :  { %v166_v26 = vpop.eup %165  ;;  %v107_v27 = vmax.f32 %v103_v22, 0.0  ;;  %v104_v28 = vsub.f32 1.0, %v164_v23 }
  0x35   :  { %v168_v29 = vpop.eup %167  ;;  %v122_v30 = vsel %vm33_vm0, %v106_v21, %v118_v24  ;;  %v119_v31 = vmax.f32 %v115_v25, 0.0  ;;  %v116_v32 = vsub.f32 1.0, %v166_v26 }
  0x36   :  { %v170_v33 = vpop.eup %169  ;;  %v126_v34 = vmul.f32 %v122_v30, %v237_v2  ;;  %v108_v35 = vmax.f32 %v104_v28, 0.0  ;;  %v105_v36 = vsub.f32 1.0, %v168_v29 }
  0x37   :  { %v123_v37 = vsel %vm33_vm0, %v107_v27, %v119_v31  ;;  %v120_v38 = vmax.f32 %v116_v32, 0.0  ;;  %v117_v39 = vsub.f32 1.0, %v170_v33 }
  0x38   :  { %130 = vst [vmem:[#allocation5] sm:$0xff] %v126_v34  ;;  %v127_v40 = vmul.f32 %v123_v37, %v240_v3  ;;  %v109_v41 = vmax.f32 %v105_v36, 0.0 }
  0x39   :  { %v124_v42 = vsel %vm33_vm0, %v108_v35, %v120_v38  ;;  %v121_v43 = vmax.f32 %v117_v39, 0.0 }
  0x3a   :  { %131 = vst [vmem:[#allocation5 + $0x8] sm:$0xff] %v127_v40  ;;  %v128_v2 = vmul.f32 %v124_v42, %v242_v4 }
  0x3b   :  { %v125_v44 = vsel %vm33_vm0, %v109_v41, %v121_v43 }
  0x3c   :  { %132 = vst [vmem:[#allocation5 + $0x10] sm:$0xff] %v128_v2  ;;  %v129_v45 = vmul.f32 %v125_v44, %v250_v8 }
  0x3e   :  { %133 = vst [vmem:[#allocation5 + $0x18] sm:$0xff] %v129_v45 }
  0x3f   :  { %202 = shalt.err (!%p199_p9)
}
  0x40   :  { %145 = dma.vmem_to_hbm [thread:$0]  %s140_s13, 512, %s289_s1, [#allocation4], %s216_s9, %s216_s9, %s217_s10  }
  0x41   :  { %213 = dma.done.wait [#allocation4], 512  }
  0x42   :  { %214 = vsyncadd [#allocation4], 4294966784 }
  0x43   :  { %149 = vsyncpa [#allocation3], 1 }
  0x44   :  { %150 = vsyncpa [#allocation4], 1 }

</bundles_post_ra>
